<compile_context>
chip_gen: v7x
topology: tpu7x:2x2x1
jax: 0.10.0
libtpu: 0.0.40
codegen_flags: <defaults>
</compile_context>

<pallas_src>
import functools

import jax
import jax.numpy as jnp
from jax.experimental import pallas as pl
from jax.experimental.pallas import tpu as pltpu


def _round_up(n, m):
    return ((n + m - 1) // m) * m


def gcn_kernel(a_ref, xp_ref, xr_ref, w_ref, b_ref, o_ref):
    tile, vp, c_in = xr_ref.shape
    c_out_p = o_ref.shape[-1]

    # 1) Graph propagation as a single lane-dense 2-D matmul (shared A_hat, all samples of
    #    the block at once):  ax[v, s*C_in + c] = sum_u A_hat[v, u] * x[u, s*C_in + c]
    ax = jnp.dot(a_ref[...], xp_ref[...],
                 preferred_element_type=jnp.float32)             # (vp, tile*c_in) f32

    # 2) Re-tile to rows=(s, v) / lanes=channels and fuse the residual branch:
    #    z = [A_hat@x | x] -> (tile*vp, 2*C_in).  Only static tile-aligned slices and
    #    concatenates are used (no lane-splitting reshape); xr_ref already carries x in
    #    (s, v, c) order so no in-kernel transpose is needed.
    xr = xr_ref[...]                                              # (tile, vp, c_in) bf16
    z_blocks = []
    for s in range(tile):                                         # static, unrolled
        ax_s = ax[:, s * c_in:(s + 1) * c_in].astype(jnp.bfloat16)   # (vp, c_in)
        z_blocks.append(jnp.concatenate([ax_s, xr[s]], axis=-1))     # (vp, 2*c_in)
    z = jnp.concatenate(z_blocks, axis=0)                         # (tile*vp, 2*c_in)

    # 3) Single stacked projection  [A@x | x] @ [[W],[W_res]]  (K = 2*C_in), f32 accumulation,
    #    bias fused.  Epilogue stays f32 on the VPU (v5e has no bf16 VPU path).
    y = jnp.dot(z, w_ref[...], preferred_element_type=jnp.float32) + b_ref[...]
    # TODO(synk): unit_GCN default ctor has activation=None -> identity epilogue.
    o_ref[...] = y.reshape(tile, vp, c_out_p).astype(o_ref.dtype)


@functools.partial(jax.jit, static_argnames=("sample_tile",))
def unit_gcn_forward(a_hat, x, w, w_res, b, *, sample_tile=16):
    """Batched GCNConv + residual projection forward.

    a_hat: (V, V) normalized adjacency shared by all samples
    x:     (S, V, C_in) node features for S graph samples
    w, w_res: (C_in, C_out), b: (C_out,)
    returns y: (S, V, C_out) bfloat16 (matmuls are bf16 with f32 accumulation)
    """
    s, v, c_in = x.shape
    c_out = w.shape[1]

    vp = _round_up(max(v, 8), 8)            # sublane-aligned node count
    c_out_p = _round_up(c_out, 128)         # lane-dense output channels (unmasked vst)
    sp = _round_up(s, sample_tile)
    assert (sample_tile * c_in) % 128 == 0, "sample_tile * C_in must be a multiple of 128"

    # ---- wrapper-side layout plumbing (one-time XLA glue) ----
    a_p = jnp.pad(a_hat, ((0, vp - v), (0, vp - v))).astype(jnp.bfloat16)
    x_pad = jnp.pad(x, ((0, sp - s), (0, vp - v), (0, 0))).astype(jnp.bfloat16)
    x_res = x_pad                                                   # (S, V, C_in) view
    # propagation view: (V, S*C_in).  A second, tiny copy of x (its DMA is hidden by the
    # pipeline) avoids any in-kernel lane-split relayout of x.
    x_prop = jnp.transpose(x_pad, (1, 0, 2)).reshape(vp, sp * c_in)
    # stacked weights [[W],[W_res]] -> (2*C_in, C_out_p); only the output dim is zero-padded.
    w_stack = jnp.pad(jnp.concatenate([w, w_res], axis=0),
                      ((0, 0), (0, c_out_p - c_out))).astype(jnp.bfloat16)
    b_p = jnp.pad(b, (0, c_out_p - c_out)).reshape(1, c_out_p).astype(jnp.float32)

    grid = (sp // sample_tile,)
    flops = 2 * sp * vp * vp * c_in + 2 * (sp * vp) * (2 * c_in) * c_out_p
    bytes_accessed = ((a_p.size + x_prop.size + x_res.size + w_stack.size) * 2
                      + b_p.size * 4 + sp * vp * c_out_p * 2)

    # Per-step VMEM (double-buffered) is well under 1 MiB at tile=16 -- far below the
    # v7x 64 MiB / v5e-v6e 128 MiB limits; re-check only if tile grows to O(256+).
    out = pl.pallas_call(
        gcn_kernel,
        out_shape=jax.ShapeDtypeStruct((sp, vp, c_out_p), jnp.bfloat16),
        grid_spec=pltpu.PrefetchScalarGridSpec(
            num_scalar_prefetch=0,
            grid=grid,
            in_specs=[
                pl.BlockSpec((vp, vp), lambda i: (0, 0)),                      # shared A_hat
                pl.BlockSpec((vp, sample_tile * c_in), lambda i: (0, i)),      # x, (V, S*C) view
                pl.BlockSpec((sample_tile, vp, c_in), lambda i: (i, 0, 0)),    # x, (S, V, C) view
                pl.BlockSpec((2 * c_in, c_out_p), lambda i: (0, 0)),           # [[W],[W_res]]
                pl.BlockSpec((1, c_out_p), lambda i: (0, 0)),                  # bias
            ],
            out_specs=pl.BlockSpec((sample_tile, vp, c_out_p), lambda i: (i, 0, 0)),
        ),
        compiler_params=pltpu.CompilerParams(
            dimension_semantics=("parallel",)),    # independent sample blocks -> v7x 2-TC sharding
        cost_estimate=pl.CostEstimate(flops=flops, transcendentals=0,
                                      bytes_accessed=bytes_accessed),
    )(a_p, x_prop, x_res, w_stack, b_p)

    return out[:s, :v, :c_out]


def normalize_adjacency(adj):
    """A_hat = D^{-1/2} (A + I) D^{-1/2}  (plain-JAX glue)."""
    n = adj.shape[0]
    a_self = adj + jnp.eye(n, dtype=adj.dtype)
    deg = jnp.sum(a_self, axis=-1)
    d_inv_sqrt = jnp.where(deg > 0, 1.0 / jnp.sqrt(deg), 0.0)
    return a_self * d_inv_sqrt[:, None] * d_inv_sqrt[None, :]


if __name__ == "__main__":
    key = jax.random.PRNGKey(0)
    k_adj, k_x, k_w, k_wres, k_b = jax.random.split(key, 5)

    # ST-GCN-like small shapes: batch=2, T=16 frames -> 32 graph samples sharing one
    # 25-joint skeleton graph; 64 -> 64 channels.
    B, T, V = 2, 16, 25
    C_in, C_out = 64, 64
    S = B * T

    # Deterministic synthetic symmetric adjacency (no self loops; added in normalization).
    logits = jax.random.uniform(k_adj, (V, V))
    adj = (logits + logits.T > 1.0).astype(jnp.float32)
    adj = adj * (1.0 - jnp.eye(V, dtype=jnp.float32))
    a_hat = normalize_adjacency(adj)

    x = jax.random.normal(k_x, (S, V, C_in), dtype=jnp.float32)
    scale = 1.0 / jnp.sqrt(jnp.float32(C_in))
    w = jax.random.normal(k_w, (C_in, C_out), dtype=jnp.float32) * scale
    w_res = jax.random.normal(k_wres, (C_in, C_out), dtype=jnp.float32) * scale
    b = jax.random.normal(k_b, (C_out,), dtype=jnp.float32) * 0.1

    y = unit_gcn_forward(a_hat, x, w, w_res, b, sample_tile=16)   # grid = 2 (even, v7x-friendly)
    y = jax.block_until_ready(y)

    # Pure-JAX f32 reference of the same semantics.
    y_ref = jnp.einsum('uv,svc->suc', a_hat, x @ w) + x @ w_res + b

    assert y.shape == (S, V, C_out)
    # bf16 MXU operands / bf16 output with f32 accumulation -> widened tolerance.
    assert jnp.allclose(y.astype(jnp.float32), y_ref, atol=5e-2, rtol=5e-2)

    print("KERNEL_OK")
</pallas_src>

<mosaic_0001>
module attributes {stable_mosaic.version = 11 : i64} {
  func.func @gcn_kernel(%arg0: i32, %arg1: memref<32x32xbf16, #tpu.memory_space<vmem>>, %arg2: memref<32x1024xbf16, #tpu.memory_space<vmem>>, %arg3: memref<16x32x64xbf16, #tpu.memory_space<vmem>>, %arg4: memref<128x128xbf16, #tpu.memory_space<vmem>>, %arg5: memref<1x128xf32, #tpu.memory_space<vmem>>, %arg6: memref<16x32x128xbf16, #tpu.memory_space<vmem>>) attributes {dimension_semantics = [#tpu.dimension_semantics<parallel>], iteration_bounds = array<i64: 2>, scalar_prefetch = 0 : i64, scratch_operands = 0 : i64, tpu.core_type = #tpu.core_type<tc>, window_params = [{pipeline_mode = #tpu.pipeline_mode<synchronous>, transform_indices = @transform_0, window_bounds = array<i64: 32, 32>}, {transform_indices = @transform_1, window_bounds = array<i64: 32, 1024>}, {transform_indices = @transform_2, window_bounds = array<i64: 16, 32, 64>}, {pipeline_mode = #tpu.pipeline_mode<synchronous>, transform_indices = @transform_3, window_bounds = array<i64: 128, 128>}, {pipeline_mode = #tpu.pipeline_mode<synchronous>, transform_indices = @transform_4, window_bounds = array<i64: 1, 128>}, {transform_indices = @transform_5, window_bounds = array<i64: 16, 32, 128>}]} {
    %c0 = arith.constant 0 : index
    %c0_0 = arith.constant 0 : index
    %0 = vector.load %arg1[%c0, %c0_0] : memref<32x32xbf16, #tpu.memory_space<vmem>>, vector<32x32xbf16>
    %c0_1 = arith.constant 0 : index
    %c0_2 = arith.constant 0 : index
    %1 = vector.load %arg2[%c0_1, %c0_2] : memref<32x1024xbf16, #tpu.memory_space<vmem>>, vector<32x1024xbf16>
    %cst = arith.constant dense<0.000000e+00> : vector<32x1024xf32>
    %2 = tpu.matmul %0, %1, %cst {dimension_numbers = #tpu.dot_dimension_numbers<[1], [0], [0], [1], [0, 0, 1, 1], [], []>} : vector<32x32xbf16>, vector<32x1024xbf16>, vector<32x1024xf32> -> vector<32x1024xf32>
    %c0_3 = arith.constant 0 : index
    %c0_4 = arith.constant 0 : index
    %c0_5 = arith.constant 0 : index
    %3 = vector.load %arg3[%c0_3, %c0_4, %c0_5] : memref<16x32x64xbf16, #tpu.memory_space<vmem>>, vector<16x32x64xbf16>
    %4 = vector.extract_strided_slice %2 {offsets = [0, 0], sizes = [32, 64], strides = [1, 1]} : vector<32x1024xf32> to vector<32x64xf32>
    %5 = arith.truncf %4 : vector<32x64xf32> to vector<32x64xbf16>
    %6 = vector.extract_strided_slice %3 {offsets = [0, 0, 0], sizes = [1, 32, 64], strides = [1, 1, 1]} : vector<16x32x64xbf16> to vector<1x32x64xbf16>
    %7 = vector.shape_cast %6 : vector<1x32x64xbf16> to vector<32x64xbf16>
    %8 = tpu.concatenate %5, %7 in 1 : vector<32x64xbf16>, vector<32x64xbf16> -> vector<32x128xbf16>
    %9 = vector.extract_strided_slice %2 {offsets = [0, 64], sizes = [32, 64], strides = [1, 1]} : vector<32x1024xf32> to vector<32x64xf32>
    %10 = arith.truncf %9 : vector<32x64xf32> to vector<32x64xbf16>
    %11 = vector.extract_strided_slice %3 {offsets = [1, 0, 0], sizes = [1, 32, 64], strides = [1, 1, 1]} : vector<16x32x64xbf16> to vector<1x32x64xbf16>
    %12 = vector.shape_cast %11 : vector<1x32x64xbf16> to vector<32x64xbf16>
    %13 = tpu.concatenate %10, %12 in 1 : vector<32x64xbf16>, vector<32x64xbf16> -> vector<32x128xbf16>
    %14 = vector.extract_strided_slice %2 {offsets = [0, 128], sizes = [32, 64], strides = [1, 1]} : vector<32x1024xf32> to vector<32x64xf32>
    %15 = arith.truncf %14 : vector<32x64xf32> to vector<32x64xbf16>
    %16 = vector.extract_strided_slice %3 {offsets = [2, 0, 0], sizes = [1, 32, 64], strides = [1, 1, 1]} : vector<16x32x64xbf16> to vector<1x32x64xbf16>
    %17 = vector.shape_cast %16 : vector<1x32x64xbf16> to vector<32x64xbf16>
    %18 = tpu.concatenate %15, %17 in 1 : vector<32x64xbf16>, vector<32x64xbf16> -> vector<32x128xbf16>
    %19 = vector.extract_strided_slice %2 {offsets = [0, 192], sizes = [32, 64], strides = [1, 1]} : vector<32x1024xf32> to vector<32x64xf32>
    %20 = arith.truncf %19 : vector<32x64xf32> to vector<32x64xbf16>
    %21 = vector.extract_strided_slice %3 {offsets = [3, 0, 0], sizes = [1, 32, 64], strides = [1, 1, 1]} : vector<16x32x64xbf16> to vector<1x32x64xbf16>
    %22 = vector.shape_cast %21 : vector<1x32x64xbf16> to vector<32x64xbf16>
    %23 = tpu.concatenate %20, %22 in 1 : vector<32x64xbf16>, vector<32x64xbf16> -> vector<32x128xbf16>
    %24 = vector.extract_strided_slice %2 {offsets = [0, 256], sizes = [32, 64], strides = [1, 1]} : vector<32x1024xf32> to vector<32x64xf32>
    %25 = arith.truncf %24 : vector<32x64xf32> to vector<32x64xbf16>
    %26 = vector.extract_strided_slice %3 {offsets = [4, 0, 0], sizes = [1, 32, 64], strides = [1, 1, 1]} : vector<16x32x64xbf16> to vector<1x32x64xbf16>
    %27 = vector.shape_cast %26 : vector<1x32x64xbf16> to vector<32x64xbf16>
    %28 = tpu.concatenate %25, %27 in 1 : vector<32x64xbf16>, vector<32x64xbf16> -> vector<32x128xbf16>
    %29 = vector.extract_strided_slice %2 {offsets = [0, 320], sizes = [32, 64], strides = [1, 1]} : vector<32x1024xf32> to vector<32x64xf32>
    %30 = arith.truncf %29 : vector<32x64xf32> to vector<32x64xbf16>
    %31 = vector.extract_strided_slice %3 {offsets = [5, 0, 0], sizes = [1, 32, 64], strides = [1, 1, 1]} : vector<16x32x64xbf16> to vector<1x32x64xbf16>
    %32 = vector.shape_cast %31 : vector<1x32x64xbf16> to vector<32x64xbf16>
    %33 = tpu.concatenate %30, %32 in 1 : vector<32x64xbf16>, vector<32x64xbf16> -> vector<32x128xbf16>
    %34 = vector.extract_strided_slice %2 {offsets = [0, 384], sizes = [32, 64], strides = [1, 1]} : vector<32x1024xf32> to vector<32x64xf32>
    %35 = arith.truncf %34 : vector<32x64xf32> to vector<32x64xbf16>
    %36 = vector.extract_strided_slice %3 {offsets = [6, 0, 0], sizes = [1, 32, 64], strides = [1, 1, 1]} : vector<16x32x64xbf16> to vector<1x32x64xbf16>
    %37 = vector.shape_cast %36 : vector<1x32x64xbf16> to vector<32x64xbf16>
    %38 = tpu.concatenate %35, %37 in 1 : vector<32x64xbf16>, vector<32x64xbf16> -> vector<32x128xbf16>
    %39 = vector.extract_strided_slice %2 {offsets = [0, 448], sizes = [32, 64], strides = [1, 1]} : vector<32x1024xf32> to vector<32x64xf32>
    %40 = arith.truncf %39 : vector<32x64xf32> to vector<32x64xbf16>
    %41 = vector.extract_strided_slice %3 {offsets = [7, 0, 0], sizes = [1, 32, 64], strides = [1, 1, 1]} : vector<16x32x64xbf16> to vector<1x32x64xbf16>
    %42 = vector.shape_cast %41 : vector<1x32x64xbf16> to vector<32x64xbf16>
    %43 = tpu.concatenate %40, %42 in 1 : vector<32x64xbf16>, vector<32x64xbf16> -> vector<32x128xbf16>
    %44 = vector.extract_strided_slice %2 {offsets = [0, 512], sizes = [32, 64], strides = [1, 1]} : vector<32x1024xf32> to vector<32x64xf32>
    %45 = arith.truncf %44 : vector<32x64xf32> to vector<32x64xbf16>
    %46 = vector.extract_strided_slice %3 {offsets = [8, 0, 0], sizes = [1, 32, 64], strides = [1, 1, 1]} : vector<16x32x64xbf16> to vector<1x32x64xbf16>
    %47 = vector.shape_cast %46 : vector<1x32x64xbf16> to vector<32x64xbf16>
    %48 = tpu.concatenate %45, %47 in 1 : vector<32x64xbf16>, vector<32x64xbf16> -> vector<32x128xbf16>
    %49 = vector.extract_strided_slice %2 {offsets = [0, 576], sizes = [32, 64], strides = [1, 1]} : vector<32x1024xf32> to vector<32x64xf32>
    %50 = arith.truncf %49 : vector<32x64xf32> to vector<32x64xbf16>
    %51 = vector.extract_strided_slice %3 {offsets = [9, 0, 0], sizes = [1, 32, 64], strides = [1, 1, 1]} : vector<16x32x64xbf16> to vector<1x32x64xbf16>
    %52 = vector.shape_cast %51 : vector<1x32x64xbf16> to vector<32x64xbf16>
    %53 = tpu.concatenate %50, %52 in 1 : vector<32x64xbf16>, vector<32x64xbf16> -> vector<32x128xbf16>
    %54 = vector.extract_strided_slice %2 {offsets = [0, 640], sizes = [32, 64], strides = [1, 1]} : vector<32x1024xf32> to vector<32x64xf32>
    %55 = arith.truncf %54 : vector<32x64xf32> to vector<32x64xbf16>
    %56 = vector.extract_strided_slice %3 {offsets = [10, 0, 0], sizes = [1, 32, 64], strides = [1, 1, 1]} : vector<16x32x64xbf16> to vector<1x32x64xbf16>
    %57 = vector.shape_cast %56 : vector<1x32x64xbf16> to vector<32x64xbf16>
    %58 = tpu.concatenate %55, %57 in 1 : vector<32x64xbf16>, vector<32x64xbf16> -> vector<32x128xbf16>
    %59 = vector.extract_strided_slice %2 {offsets = [0, 704], sizes = [32, 64], strides = [1, 1]} : vector<32x1024xf32> to vector<32x64xf32>
    %60 = arith.truncf %59 : vector<32x64xf32> to vector<32x64xbf16>
    %61 = vector.extract_strided_slice %3 {offsets = [11, 0, 0], sizes = [1, 32, 64], strides = [1, 1, 1]} : vector<16x32x64xbf16> to vector<1x32x64xbf16>
    %62 = vector.shape_cast %61 : vector<1x32x64xbf16> to vector<32x64xbf16>
    %63 = tpu.concatenate %60, %62 in 1 : vector<32x64xbf16>, vector<32x64xbf16> -> vector<32x128xbf16>
    %64 = vector.extract_strided_slice %2 {offsets = [0, 768], sizes = [32, 64], strides = [1, 1]} : vector<32x1024xf32> to vector<32x64xf32>
    %65 = arith.truncf %64 : vector<32x64xf32> to vector<32x64xbf16>
    %66 = vector.extract_strided_slice %3 {offsets = [12, 0, 0], sizes = [1, 32, 64], strides = [1, 1, 1]} : vector<16x32x64xbf16> to vector<1x32x64xbf16>
    %67 = vector.shape_cast %66 : vector<1x32x64xbf16> to vector<32x64xbf16>
    %68 = tpu.concatenate %65, %67 in 1 : vector<32x64xbf16>, vector<32x64xbf16> -> vector<32x128xbf16>
    %69 = vector.extract_strided_slice %2 {offsets = [0, 832], sizes = [32, 64], strides = [1, 1]} : vector<32x1024xf32> to vector<32x64xf32>
    %70 = arith.truncf %69 : vector<32x64xf32> to vector<32x64xbf16>
    %71 = vector.extract_strided_slice %3 {offsets = [13, 0, 0], sizes = [1, 32, 64], strides = [1, 1, 1]} : vector<16x32x64xbf16> to vector<1x32x64xbf16>
    %72 = vector.shape_cast %71 : vector<1x32x64xbf16> to vector<32x64xbf16>
    %73 = tpu.concatenate %70, %72 in 1 : vector<32x64xbf16>, vector<32x64xbf16> -> vector<32x128xbf16>
    %74 = vector.extract_strided_slice %2 {offsets = [0, 896], sizes = [32, 64], strides = [1, 1]} : vector<32x1024xf32> to vector<32x64xf32>
    %75 = arith.truncf %74 : vector<32x64xf32> to vector<32x64xbf16>
    %76 = vector.extract_strided_slice %3 {offsets = [14, 0, 0], sizes = [1, 32, 64], strides = [1, 1, 1]} : vector<16x32x64xbf16> to vector<1x32x64xbf16>
    %77 = vector.shape_cast %76 : vector<1x32x64xbf16> to vector<32x64xbf16>
    %78 = tpu.concatenate %75, %77 in 1 : vector<32x64xbf16>, vector<32x64xbf16> -> vector<32x128xbf16>
    %79 = vector.extract_strided_slice %2 {offsets = [0, 960], sizes = [32, 64], strides = [1, 1]} : vector<32x1024xf32> to vector<32x64xf32>
    %80 = arith.truncf %79 : vector<32x64xf32> to vector<32x64xbf16>
    %81 = vector.extract_strided_slice %3 {offsets = [15, 0, 0], sizes = [1, 32, 64], strides = [1, 1, 1]} : vector<16x32x64xbf16> to vector<1x32x64xbf16>
    %82 = vector.shape_cast %81 : vector<1x32x64xbf16> to vector<32x64xbf16>
    %83 = tpu.concatenate %80, %82 in 1 : vector<32x64xbf16>, vector<32x64xbf16> -> vector<32x128xbf16>
    %84 = tpu.concatenate %8, %13, %18, %23, %28, %33, %38, %43, %48, %53, %58, %63, %68, %73, %78, %83 in 0 : vector<32x128xbf16>, vector<32x128xbf16>, vector<32x128xbf16>, vector<32x128xbf16>, vector<32x128xbf16>, vector<32x128xbf16>, vector<32x128xbf16>, vector<32x128xbf16>, vector<32x128xbf16>, vector<32x128xbf16>, vector<32x128xbf16>, vector<32x128xbf16>, vector<32x128xbf16>, vector<32x128xbf16>, vector<32x128xbf16>, vector<32x128xbf16> -> vector<512x128xbf16>
    %c0_6 = arith.constant 0 : index
    %c0_7 = arith.constant 0 : index
    %85 = vector.load %arg4[%c0_6, %c0_7] : memref<128x128xbf16, #tpu.memory_space<vmem>>, vector<128x128xbf16>
    %cst_8 = arith.constant dense<0.000000e+00> : vector<512x128xf32>
    %86 = tpu.matmul %84, %85, %cst_8 {dimension_numbers = #tpu.dot_dimension_numbers<[1], [0], [0], [1], [0, 0, 1, 1], [], []>} : vector<512x128xbf16>, vector<128x128xbf16>, vector<512x128xf32> -> vector<512x128xf32>
    %c0_9 = arith.constant 0 : index
    %c0_10 = arith.constant 0 : index
    %87 = vector.load %arg5[%c0_9, %c0_10] : memref<1x128xf32, #tpu.memory_space<vmem>>, vector<1x128xf32>
    %88 = vector.broadcast %87 : vector<1x128xf32> to vector<512x128xf32>
    %89 = arith.addf %86, %88 : vector<512x128xf32>
    %90 = vector.shape_cast %89 : vector<512x128xf32> to vector<16x32x128xf32>
    %91 = arith.truncf %90 : vector<16x32x128xf32> to vector<16x32x128xbf16>
    %c0_11 = arith.constant 0 : index
    %c0_12 = arith.constant 0 : index
    %c0_13 = arith.constant 0 : index
    %92 = vector.load %arg6[%c0_11, %c0_12, %c0_13] : memref<16x32x128xbf16, #tpu.memory_space<vmem>>, vector<16x32x128xbf16>
    tpu.vector_store %arg6[%c0_11, %c0_12, %c0_13], %91 {strides = array<i32>} : memref<16x32x128xbf16, #tpu.memory_space<vmem>>, vector<16x32x128xbf16>,
    return
  }
  func.func @transform_0(%arg0: i32) -> (i32, i32) {
    %c0_i32 = arith.constant 0 : i32
    %c0_i32_0 = arith.constant 0 : i32
    %c0_i32_1 = arith.constant 0 : i32
    return %c0_i32, %c0_i32_0 : i32, i32
  }
  func.func @transform_1(%arg0: i32) -> (i32, i32) {
    %c0_i32 = arith.constant 0 : i32
    %c0_i32_0 = arith.constant 0 : i32
    return %c0_i32, %arg0 : i32, i32
  }
  func.func @transform_2(%arg0: i32) -> (i32, i32, i32) {
    %c0_i32 = arith.constant 0 : i32
    %c0_i32_0 = arith.constant 0 : i32
    %c0_i32_1 = arith.constant 0 : i32
    return %arg0, %c0_i32, %c0_i32_0 : i32, i32, i32
  }
  func.func @transform_3(%arg0: i32) -> (i32, i32) {
    %c0_i32 = arith.constant 0 : i32
    %c0_i32_0 = arith.constant 0 : i32
    %c0_i32_1 = arith.constant 0 : i32
    return %c0_i32, %c0_i32_0 : i32, i32
  }
  func.func @transform_4(%arg0: i32) -> (i32, i32) {
    %c0_i32 = arith.constant 0 : i32
    %c0_i32_0 = arith.constant 0 : i32
    %c0_i32_1 = arith.constant 0 : i32
    return %c0_i32, %c0_i32_0 : i32, i32
  }
  func.func @transform_5(%arg0: i32) -> (i32, i32, i32) {
    %c0_i32 = arith.constant 0 : i32
    %c0_i32_0 = arith.constant 0 : i32
    %c0_i32_1 = arith.constant 0 : i32
    return %arg0, %c0_i32, %c0_i32_0 : i32, i32, i32
  }
}

</mosaic_0001>

<bundles_post_ra>
// kernel: unit_gcn_forward.1
= control target key start
LH: loop header
LB: loop body
LE: loop exit
PB: predicated region body
PF: predicated region fallthrough
CT: control target
= control target key end

     0   :  { %s2537_s18 = smov 0   ;;  %s2539_s19 = smov 0   ;;  %s2946_s0 = inlined_call_operand.vmem [shape: bf16[32,32], index: 0, kind: input, shape index: {}]   ;;  %s2947_s1 = inlined_call_operand.vmem [shape: bf16[32,2048], index: 1, kind: input, shape index: {}]   ;;  %s2948_s2 = inlined_call_operand.vmem [shape: bf16[32,32,64], index: 2, kind: input, shape index: {}]   ;;  %s2949_s3 = inlined_call_operand.vmem [shape: bf16[128,128], index: 3, kind: input, shape index: {}]   ;;  %s2950_s4 = inlined_call_operand.vmem [shape: f32[1,128], index: 4, kind: input, shape index: {}]   ;;  %s2951_s5 = inlined_call_operand.vmem [shape: bf16[32,32,128], index: 5, kind: output, shape index: {}]  }
   0x1   :  { %s2541_s20 = smov 0  }
   0x2 LB: > { %s1871_s21 = sadd.s32 4294967295, %s2503_s20   ;;  %s2554_s22 = sadd.s32 1, %s2503_s20   ;;  %s2503_s20 = sphi %s2541_s20, %s2954_s20   ;;  %s2499_s19 = sphi %s2539_s19, %s2953_s19   ;;  %s2495_s18 = sphi %s2537_s18, %s2952_s18  }
   0x3   : > { %s40_s23 = ssub.s32 %s2503_s20, %s2554_s22  ;;  %s43_s24 = sadd.s32 1, %s2499_s19 }
   0x4   : > { %p41_p0 = scmp.eq.s32.totalorder %s40_s23, 0  ;;  %p50_p1 = scmp.ne.s32.totalorder %s2499_s19, %s2495_s18 }
   0x5   : > { %p51_p2 = scmp.eq.s32.totalorder %s2503_s20, 0  ;;  %p1874_p4 = scmp.ge.s32.totalorder %s2503_s20, 2 }
   0x6   : > { %s2563_s25 = scalar_select %p41_p0, %s2499_s19, %s43_s24  }
   0x7   : > { %p52_p3 = por %p51_p2, %p50_p1  ;;  %179 = sbr.rel (%p1874_p4) target bundleno = 26 (0x1a), region = 28 }
   0xe   : > { %182 = sbr.rel (!%p52_p3) target bundleno = 26 (0x1a), region = 32  ;;  %s184_s26 = sand.u32 (%p52_p3), 1, %s2499_s19  }
   0xf   : > { %s2019_s27 = sshll.u32 (%p52_p3), %s2503_s20, 5  ;;  %s1875_s28 = sshll.u32 (%p52_p3), %s184_s26, 7 }
  0x10   : > { %s2571_s6 = scalar_lea.vmem (%p52_p3), %s2947_s1, %s2019_s27  ;;  %s186_s7 = scalar_lea.vmem (%p52_p3), [#allocation2], %s1875_s28 }
  0x11   : > { %v202_v0 = vld [vmem:[%s2571_s6] sm:$0xff] (%p52_p3)  ;;  %v204_v1 = vld [vmem:[%s2571_s6 + $0x8] sm:$0xff] (%p52_p3)  ;;  %v206_v2 = vld [vmem:[%s2571_s6 + $0x10] sm:$0xff] (%p52_p3) }
  0x12   : > { %203 = vst [vmem:[%s186_s7] sm:$0xff] (%p52_p3), %v202_v0  ;;  %205 = vst [vmem:[%s186_s7 + $0x8] sm:$0xff] (%p52_p3), %v204_v1  ;;  %v208_v3 = vld [vmem:[%s2571_s6 + $0x18] sm:$0xff] (%p52_p3)  ;;  %v210_v4 = vld [vmem:[%s2571_s6 + $0x40] sm:$0xff] (%p52_p3) }
  0x13   : > { %207 = vst [vmem:[%s186_s7 + $0x10] sm:$0xff] (%p52_p3), %v206_v2  ;;  %v212_v5 = vld [vmem:[%s2571_s6 + $0x48] sm:$0xff] (%p52_p3)  ;;  %209 = vst [vmem:[%s186_s7 + $0x18] sm:$0xff] (%p52_p3), %v208_v3  ;;  %v214_v6 = vld [vmem:[%s2571_s6 + $0x50] sm:$0xff] (%p52_p3) }
  0x14   : > { %211 = vst [vmem:[%s186_s7 + $0x20] sm:$0xff] (%p52_p3), %v210_v4  ;;  %213 = vst [vmem:[%s186_s7 + $0x28] sm:$0xff] (%p52_p3), %v212_v5  ;;  %v216_v7 = vld [vmem:[%s2571_s6 + $0x58] sm:$0xff] (%p52_p3)  ;;  %v218_v8 = vld [vmem:[%s2571_s6 + $0x80] sm:$0xff] (%p52_p3) }
  0x15   : > { %215 = vst [vmem:[%s186_s7 + $0x30] sm:$0xff] %v214_v6  ;;  %217 = vst [vmem:[%s186_s7 + $0x38] sm:$0xff] %v216_v7  ;;  %v220_v9 = vld [vmem:[%s2571_s6 + $0x88] sm:$0xff]  ;;  %v222_v10 = vld [vmem:[%s2571_s6 + $0x90] sm:$0xff] }
  0x16   : > { %219 = vst [vmem:[%s186_s7 + $0x40] sm:$0xff] %v218_v8  ;;  %v224_v11 = vld [vmem:[%s2571_s6 + $0x98] sm:$0xff]  ;;  %221 = vst [vmem:[%s186_s7 + $0x48] sm:$0xff] %v220_v9  ;;  %v226_v12 = vld [vmem:[%s2571_s6 + $0xc0] sm:$0xff] }
  0x17   : > { %223 = vst [vmem:[%s186_s7 + $0x50] sm:$0xff] %v222_v10  ;;  %225 = vst [vmem:[%s186_s7 + $0x58] sm:$0xff] %v224_v11  ;;  %v228_v13 = vld [vmem:[%s2571_s6 + $0xc8] sm:$0xff]  ;;  %v230_v14 = vld [vmem:[%s2571_s6 + $0xd0] sm:$0xff] }
  0x18   : > { %227 = vst [vmem:[%s186_s7 + $0x60] sm:$0xff] %v226_v12  ;;  %229 = vst [vmem:[%s186_s7 + $0x68] sm:$0xff] %v228_v13  ;;  %v232_v15 = vld [vmem:[%s2571_s6 + $0xd8] sm:$0xff] }
  0x19   : > { %231 = vst [vmem:[%s186_s7 + $0x70] sm:$0xff] %v230_v14  ;;  %233 = vst [vmem:[%s186_s7 + $0x78] sm:$0xff] %v232_v15 }
  0x1a PF: > { %p1878_p5 = scmp.ge.s32.totalorder %s2503_s20, 1  ;;  %p248_p6 = scmp.lt.s32.totalorder %s2503_s20, 3 }
  0x1c   : > { %p249_p7 = pnand %p1878_p5, %p248_p6 }
  0x1d   : > { %s255_s8 = sand.u32 (!%p249_p7), 1, %s2495_s18   ;;  %v2505_v16 = vmov (!%p249_p7), 0   ;;  %s1880_s10 = sshll.u32 (!%p249_p7), %s1871_s21, 4  ;;  %v2439_v40 = vld [vmem:[%s2946_s0] sm:$0xff] (!%p249_p7)   ;;  %vm415_vm0 = vcmask (!%p249_p7), 261120   ;;  %v2440_v53 = vld [vmem:[%s2946_s0 + $0x8] sm:$0xff] (!%p249_p7)  }
  0x1e   : > { %252 = sbr.rel (%p249_p7) target bundleno = 668 (0x29c), region = 59  ;;  %s1879_s9 = sshll.u32 (!%p249_p7), %s255_s8, 7  ;;  %454 = vmatprep.mubr.bf16.mxu0 (!%p249_p7), %v2505_v16  ;;  %507 = vmatprep.mubr.bf16.mxu1 (!%p249_p7), %v2505_v16  ;;  %v2466_v63 = vld [vmem:[%s2949_s3] sm:$0xff] (!%p249_p7)   ;;  %v2467_v0 = vld [vmem:[%s2949_s3 + $0x8] sm:$0xff] (!%p249_p7)   ;;  %v2468_v2 = vld [vmem:[%s2949_s3 + $0x10] sm:$0xff] (!%p249_p7)   ;;  %vm714_vm1 = vcmask (!%p249_p7), 523264  }
  0x1f   : > { %s2596_s11 = scalar_lea.vmem (!%p249_p7), [#allocation2], %s1879_s9  ;;  %p291_p8 = scmp.lt.s32.totalorder (!%p249_p7), %s1880_s10, 31  ;;  %v2469_v4 = vld [vmem:[%s2949_s3 + $0x18] sm:$0xff] (!%p249_p7)   ;;  %v2470_v6 = vld [vmem:[%s2949_s3 + $0x20] sm:$0xff] (!%p249_p7)  }
  0x20   : > { %v309_v17 = vld [vmem:[%s2596_s11] sm:$0xff] (!%p249_p7)  ;;  %v311_v24 = vld [vmem:[%s2596_s11 + $0x10] sm:$0xff] (!%p249_p7)  ;;  %v310_v26 = vld [vmem:[%s2596_s11 + $0x8] sm:$0xff] (!%p249_p7)  ;;  %s2506_s18 = smov (!%p249_p7), 64  }
  0x21   : > { %v313_v18 = vld [vmem:[%s2596_s11 + $0x20] sm:$0xff] (!%p249_p7)  ;;  %v315_v25 = vld [vmem:[%s2596_s11 + $0x30] sm:$0xff] (!%p249_p7)  ;;  %v314_v27 = vld [vmem:[%s2596_s11 + $0x28] sm:$0xff] (!%p249_p7) }
  0x22   : > { %v317_v19 = vld [vmem:[%s2596_s11 + $0x40] sm:$0xff] (!%p249_p7)  ;;  %v1889_v20 = vcombine.high (!%p249_p7), %v309_v17, %v313_v18  ;;  %v1888_v21 = vcombine.low (!%p249_p7), %v309_v17, %v313_v18  ;;  %v318_v28 = vld [vmem:[%s2596_s11 + $0x48] sm:$0xff] (!%p249_p7)  ;;  %v319_v31 = vld [vmem:[%s2596_s11 + $0x50] sm:$0xff] (!%p249_p7)  ;;  %v1891_v33 = vcombine.high (!%p249_p7), %v310_v26, %v314_v27  ;;  %v1890_v34 = vcombine.low (!%p249_p7), %v310_v26, %v314_v27 }
  0x23   : > { %v321_v22 = vld [vmem:[%s2596_s11 + $0x60] sm:$0xff] (!%p249_p7)  ;;  %v322_v29 = vld [vmem:[%s2596_s11 + $0x68] sm:$0xff] (!%p249_p7)  ;;  %v323_v32 = vld [vmem:[%s2596_s11 + $0x70] sm:$0xff] (!%p249_p7)  ;;  %v1893_v37 = vcombine.high (!%p249_p7), %v311_v24, %v315_v25  ;;  %v1892_v42 = vcombine.low (!%p249_p7), %v311_v24, %v315_v25 }
  0x24   : > { %v1897_v23 = vcombine.high (!%p249_p7), %v317_v19, %v321_v22  ;;  %422 = vmatprep.subr.bf16.mxu0 (!%p249_p7), %v1889_v20  ;;  %v1896_v30 = vcombine.low (!%p249_p7), %v317_v19, %v321_v22  ;;  %v1899_v35 = vcombine.high (!%p249_p7), %v318_v28, %v322_v29  ;;  %v312_v36 = vld [vmem:[%s2596_s11 + $0x18] sm:$0xff] (!%p249_p7)  ;;  %475 = vmatprep.subr.bf16.mxu1 (!%p249_p7), %v1891_v33  ;;  %v2471_v17 = vld [vmem:[%s2949_s3 + $0x28] sm:$0xff] (!%p249_p7)   ;;  %v2472_v18 = vld [vmem:[%s2949_s3 + $0x30] sm:$0xff] (!%p249_p7)  }
  0x25   : > { %s2956_s10 = smov (!%p291_p8, %s1880_s10), 31  ;;  %423 = vmatpush1.bf16.msra.mxu0 %v1888_v21  ;;  %v316_v38 = vld [vmem:[%s2596_s11 + $0x38] sm:$0xff]  ;;  %476 = vmatpush1.bf16.msra.mxu1 %v1890_v34  ;;  %v1898_v41 = vcombine.low %v318_v28, %v322_v29  ;;  %v1901_v44 = vcombine.high %v319_v31, %v323_v32  ;;  %v1900_v49 = vcombine.low %v319_v31, %v323_v32 }
  0x26   : > { %s2020_s12 = sshll.u32 %s2956_s10, 4  ;;  %424 = vmatprep.subr.bf16.mxu0 %v1897_v23  ;;  %477 = vmatprep.subr.bf16.mxu1 %v1899_v35  ;;  %v320_v43 = vld [vmem:[%s2596_s11 + $0x58] sm:$0xff]  ;;  %v1895_v45 = vcombine.high %v312_v36, %v316_v38  ;;  %v1894_v48 = vcombine.low %v312_v36, %v316_v38 }
  0x27   : > { %s2620_s15 = scalar_lea.vmem %s2948_s2, %s2020_s12  ;;  %v324_v46 = vld [vmem:[%s2596_s11 + $0x78] sm:$0xff]  ;;  %s2841_s23 = scalar_lea.vmem %s2951_s5, %s2020_s12 }
  0x28   : > { %v2441_v39 = vld [vmem:[%s2620_s15 + $0x8] sm:$0xff]   ;;  %v1903_v50 = vcombine.high %v320_v43, %v324_v46  ;;  %v2443_v51 = vld [vmem:[%s2620_s15 + $0x10] sm:$0xff]   ;;  %v2449_v52 = vld [vmem:[%s2620_s15] sm:$0xff]   ;;  %v1902_v54 = vcombine.low %v320_v43, %v324_v46 }
  0x29   : > { %425 = vmatpush1.bf16.msra.mxu0 %v1896_v30  ;;  %712 = vrot.lane.b32.xlu1 %v2441_v39, %s2506_s18  ;;  %v2442_v47 = vld [vmem:[%s2620_s15 + $0x88] sm:$0xff]   ;;  %v2451_v55 = vld [vmem:[%s2620_s15 + $0x80] sm:$0xff]   ;;  %v2444_v56 = vld [vmem:[%s2620_s15 + $0x90] sm:$0xff]  }
  0x2a   : > { %528 = vmatprep.subr.bf16.mxu0 %v1893_v37  ;;  %478 = vmatpush1.bf16.msra.mxu1 %v1898_v41  ;;  %v2453_v57 = vld [vmem:[%s2620_s15 + $0x20] sm:$0xff]   ;;  %v2445_v58 = vld [vmem:[%s2620_s15 + $0x18] sm:$0xff]   ;;  %v2456_v59 = vld [vmem:[%s2620_s15 + $0x28] sm:$0xff]  }
  0x2b   : > { %581 = vmatprep.subr.bf16.mxu1 %v1895_v45  ;;  %710 = vrot.lane.b32.xlu0 %v2449_v52, %s2506_s18  ;;  %v2446_v60 = vld [vmem:[%s2620_s15 + $0x98] sm:$0xff]   ;;  %v2460_v61 = vld [vmem:[%s2620_s15 + $0x40] sm:$0xff]   ;;  %v2448_v1 = vld [vmem:[%s2620_s15 + $0xa8] sm:$0xff]  }
  0x2c   : > { %1904 = vmatmul.mubr.msk.bf16.vlgmr.msra.gmra.mrb[0].mxu0 %vm415_vm0, %v2439_v40  ;;  %v2447_v62 = vld [vmem:[%s2620_s15 + $0xa0] sm:$0xff]   ;;  %v2450_v3 = vld [vmem:[%s2620_s15 + $0x30] sm:$0xff]   ;;  %v2454_v7 = vld [vmem:[%s2620_s15 + $0x38] sm:$0xff]  }
  0x2d   : > { %529 = vmatpush1.bf16.msra.mxu0 %v1892_v42  ;;  %464 = vmatprep.mubr.bf16.mxu0 %v2505_v16  ;;  %v2452_v5 = vld [vmem:[%s2620_s15 + $0xb0] sm:$0xff]   ;;  %v2455_v8 = vld [vmem:[%s2620_s15 + $0xb8] sm:$0xff]   ;;  %v2457_v9 = vld [vmem:[%s2620_s15 + $0xc0] sm:$0xff]  }
  0x2e   : > { %530 = vmatprep.subr.bf16.mxu0 %v1901_v44  ;;  %1906 = vmatmul.mubr.msk.bf16.vlgmr.msra.gmra.mrb[0].mxu1 %vm415_vm0, %v2439_v40  ;;  %v2458_v10 = vld [vmem:[%s2620_s15 + $0xc8] sm:$0xff]   ;;  %v2459_v11 = vld [vmem:[%s2620_s15 + $0x50] sm:$0xff]   ;;  %v2462_v13 = vld [vmem:[%s2620_s15 + $0x58] sm:$0xff]  }
  0x2f   : > { %921 = vrot.lane.b32.xlu1 %v2442_v47, %s2506_s18  ;;  %582 = vmatpush1.bf16.msra.mxu1 %v1894_v48  ;;  %v2461_v12 = vld [vmem:[%s2620_s15 + $0xd0] sm:$0xff]   ;;  %v2463_v14 = vld [vmem:[%s2620_s15 + $0xd8] sm:$0xff]   ;;  %v2464_v15 = vld [vmem:[%s2620_s15 + $0xe0] sm:$0xff]  }
  0x30   : > { %517 = vmatprep.mubr.bf16.mxu1 %v2505_v16  ;;  %583 = vmatprep.subr.bf16.mxu1 %v1903_v50  ;;  %v2473_v19 = vld [vmem:[%s2949_s3 + $0x38] sm:$0xff]   ;;  %v2477_v20 = vld [vmem:[%s2620_s15 + $0x70] sm:$0xff]  }
  0x31   : > { %531 = vmatpush1.bf16.msra.mxu0 %v1900_v49  ;;  %919 = vrot.lane.b32.xlu0 %v2451_v55, %s2506_s18  ;;  %v2478_v21 = vld [vmem:[%s2620_s15 + $0xf0] sm:$0xff]   ;;  %v2479_v22 = vld [vmem:[%s2620_s15 + $0x78] sm:$0xff]  }
  0x32   : > { %2317 = vmatprep.subr.bf16.mxu0 %v2466_v63  ;;  %v2480_v23 = vld [vmem:[%s2620_s15 + $0xf8] sm:$0xff]  }
  0x33   : > { %739 = vrot.lane.b32.xlu1 %v2443_v51, %s2506_s18  ;;  %584 = vmatpush1.bf16.msra.mxu1 %v1902_v54 }
  0x34   : > { %1905 = vmatmul.mubr.msk.bf16.gmra.mrb[4].mxu0 %vm415_vm0, %v2440_v53  ;;  %2397 = vmatprep.subr.bf16.mxu1 %v2466_v63 }
  0x35   : > { %560 = vmatprep.mubr.bf16.mxu0 %v2505_v16  ;;  %763 = vrot.lane.b32.xlu0 %v2453_v57, %s2506_s18 }
  0x36   : > { %1907 = vmatmul.mubr.msk.bf16.gmra.mrb[4].mxu1 %vm415_vm0, %v2440_v53 }
  0x37   : > { %947 = vrot.lane.b32.xlu1 %v2444_v56, %s2506_s18  ;;  %613 = vmatprep.mubr.bf16.mxu1 %v2505_v16 }
  0x39   : > { %765 = vrot.lane.b32.xlu0 %v2456_v59, %s2506_s18 }
  0x3b   : > { %741 = vrot.lane.b32.xlu1 %v2445_v58, %s2506_s18 }
  0x3c   : > { %1908 = vmatmul.mubr.msk.bf16.vlgmr.msra.gmra.mrb[8].mxu0 %vm415_vm0, %v2439_v40 }
  0x3d   : > { %570 = vmatprep.mubr.bf16.mxu0 %v2505_v16  ;;  %815 = vrot.lane.b32.xlu0 %v2460_v61, %s2506_s18 }
  0x3e   : > { %1910 = vmatmul.mubr.msk.bf16.vlgmr.msra.gmra.mrb[8].mxu1 %vm415_vm0, %v2439_v40  ;;  %2318 = vmatpush3.bf16.msra.mxu0 %v2466_v63 }
  0x3f   : > { %949 = vrot.lane.b32.xlu1 %v2446_v60, %s2506_s18  ;;  %623 = vmatprep.mubr.bf16.mxu1 %v2505_v16  ;;  %v2465_v16 = vld [vmem:[%s2620_s15 + $0xe8] sm:$0xff]  }
  0x40   : > { %2319 = vmatprep.subr.bf16.mxu0 %v2467_v0  ;;  %2405 = vmatpush3.bf16.msra.mxu1 %v2466_v63 }
  0x41   : > { %2398 = vmatprep.subr.bf16.mxu1 %v2467_v0 }
  0x42   : > { %2320 = vmatpush3.bf16.msra.mxu0 %v2467_v0 }
  0x43   : > { %971 = vrot.lane.b32.xlu1 %v2447_v62, %s2506_s18  ;;  %2321 = vmatprep.subr.bf16.mxu0 %v2468_v2 }
  0x44   : > { %1909 = vmatmul.mubr.msk.bf16.gmra.mrb[12].mxu0 %vm415_vm0, %v2440_v53  ;;  %2406 = vmatpush3.bf16.msra.mxu1 %v2467_v0 }
  0x45   : > { %2399 = vmatprep.subr.bf16.mxu1 %v2468_v2 }
  0x46   : > { %1911 = vmatmul.mubr.msk.bf16.gmra.mrb[12].mxu1 %vm415_vm0, %v2440_v53  ;;  %2322 = vmatpush3.bf16.msra.mxu0 %v2468_v2 }
  0x47   : > { %973 = vrot.lane.b32.xlu1 %v2448_v1, %s2506_s18  ;;  %2323 = vmatprep.subr.bf16.mxu0 %v2469_v4 }
  0x48   : > { %2407 = vmatpush3.bf16.msra.mxu1 %v2468_v2 }
  0x49   : > { %2400 = vmatprep.subr.bf16.mxu1 %v2469_v4 }
  0x4a   : > { %2324 = vmatpush3.bf16.msra.mxu0 %v2469_v4 }
  0x4b   : > { %791 = vrot.lane.b32.xlu1 %v2450_v3, %s2506_s18  ;;  %2325 = vmatprep.subr.bf16.mxu0 %v2470_v6 }
  0x4c   : > { %2408 = vmatpush3.bf16.msra.mxu1 %v2469_v4 }
  0x4d   : > { %2401 = vmatprep.subr.bf16.mxu1 %v2470_v6 }
  0x4e   : > { %2326 = vmatpush3.bf16.msra.mxu0 %v2470_v6 }
  0x4f   : > { %999 = vrot.lane.b32.xlu1 %v2452_v5, %s2506_s18  ;;  %2327 = vmatprep.subr.bf16.mxu0 %v2471_v17 }
  0x50   : > { %2409 = vmatpush3.bf16.msra.mxu1 %v2470_v6 }
  0x51   : > { %2402 = vmatprep.subr.bf16.mxu1 %v2471_v17 }
  0x52   : > { %2328 = vmatpush3.bf16.msra.mxu0 %v2471_v17 }
  0x53   : > { %793 = vrot.lane.b32.xlu1 %v2454_v7, %s2506_s18  ;;  %2329 = vmatprep.subr.bf16.mxu0 %v2472_v18 }
  0x54   : > { %2410 = vmatpush3.bf16.msra.mxu1 %v2471_v17  ;;  %v2475_v17 = vld [vmem:[%s2620_s15 + $0x60] sm:$0xff]  }
  0x55   : > { %2403 = vmatprep.subr.bf16.mxu1 %v2472_v18 }
  0x56   : > { %2330 = vmatpush3.bf16.msra.mxu0 %v2472_v18 }
  0x57   : > { %1001 = vrot.lane.b32.xlu1 %v2455_v8, %s2506_s18  ;;  %2331 = vmatprep.subr.bf16.mxu0 %v2473_v19 }
  0x58   : > { %2411 = vmatpush3.bf16.msra.mxu1 %v2472_v18  ;;  %v2476_v18 = vld [vmem:[%s2620_s15 + $0x68] sm:$0xff]  }
  0x59   : > { %2404 = vmatprep.subr.bf16.mxu1 %v2473_v19 }
  0x5a   : > { %2332 = vmatpush3.bf16.msra.mxu0 %v2473_v19 }
  0x5b   : > { %1023 = vrot.lane.b32.xlu1 %v2457_v9, %s2506_s18 }
  0x5c   : > { %2412 = vmatpush3.bf16.msra.mxu1 %v2473_v19 }
  0x5f   : > { %1025 = vrot.lane.b32.xlu1 %v2458_v10, %s2506_s18 }
  0x63   : > { %843 = vrot.lane.b32.xlu1 %v2459_v11, %s2506_s18 }
  0x67   : > { %1051 = vrot.lane.b32.xlu1 %v2461_v12, %s2506_s18  ;;  %v2474_v12 = vld [vmem:[%s2620_s15 + $0x48] sm:$0xff]  }
  0x6b   : > { %845 = vrot.lane.b32.xlu1 %v2462_v13, %s2506_s18 }
  0x6f   : > { %1053 = vrot.lane.b32.xlu1 %v2463_v14, %s2506_s18 }
  0x73   : > { %1075 = vrot.lane.b32.xlu1 %v2464_v15, %s2506_s18 }
  0x77   : > { %1077 = vrot.lane.b32.xlu1 %v2465_v16, %s2506_s18 }
  0x7b   : > { %895 = vrot.lane.b32.xlu1 %v2477_v20, %s2506_s18 }
  0x7f   : > { %1103 = vrot.lane.b32.xlu1 %v2478_v21, %s2506_s18 }
  0x83   : > { %897 = vrot.lane.b32.xlu1 %v2479_v22, %s2506_s18 }
  0x87   : > { %1105 = vrot.lane.b32.xlu1 %v2480_v23, %s2506_s18 }
  0x9b   : > { %v713_v44 = vpop.permute.xlu1 %712 }
  0x9d   : > { %v711_v30 = vpop.permute.xlu0 %710 }
  0xa1   : > { %v922_v8 = vpop.permute.xlu1 %921 }
  0xa3   : > { %v920_v58 = vpop.permute.xlu0 %919 }
  0xa5   : > { %v740_v19 = vpop.permute.xlu1 %739 }
  0xa9   : > { %v948_v20 = vpop.permute.xlu1 %947 }
  0xad   : > { %v742_v21 = vpop.permute.xlu1 %741 }
  0xb1   : > { %v950_v22 = vpop.permute.xlu1 %949 }
  0xb5   : > { %v972_v23 = vpop.permute.xlu1 %971 }
  0xff   : > { %v456_v24 = vpop.f32.mrb[0].mxu0 }
 0x100   : > { %v458_v25 = vpop.f32.mrb[1].mxu0 }
 0x101   : > { %v460_v26 = vpop.f32.mrb[2].mxu0  ;;  %v509_v29 = vpop.f32.mrb[0].mxu1 }
 0x102   : > { %v698_v27 = vpack.c.bf16 %v460_v26, %v456_v24  ;;  %v462_v28 = vpop.f32.mrb[3].mxu0  ;;  %v511_v32 = vpop.f32.mrb[1].mxu1 }
 0x103   : > { %v2726_v31 = vpack.c.bf16 %v462_v28, %v458_v25  ;;  %v513_v34 = vpop.f32.mrb[2].mxu1  ;;  %v974_v24 = vpop.permute.xlu1 %973 }
 0x104   : > { %725 = vrot.lane.b32.xlu0 %v698_v27, %s2506_s18  ;;  %v717_v33 = vsel %vm714_vm1, %v698_v27, %v711_v30  ;;  %v2730_v35 = vpack.c.bf16 %v513_v34, %v509_v29  ;;  %v515_v36 = vpop.f32.mrb[3].mxu1  ;;  %v764_v26 = vpop.permute.xlu0 %763 }
 0x105   : > { %2333 = vmatprep.mubr.bf16.mxu0 %v717_v33  ;;  %v2732_v37 = vpack.c.bf16 %v515_v36, %v511_v32 }
 0x107   : > { %v466_v38 = vpop.f32.mrb[4].mxu0  ;;  %v792_v25 = vpop.permute.xlu1 %791 }
 0x108   : > { %777 = vrot.lane.b32.xlu0 %v2726_v31, %s2506_s18  ;;  %v468_v39 = vpop.f32.mrb[5].mxu0  ;;  %v766_v28 = vpop.permute.xlu0 %765 }
 0x109   : > { %v470_v40 = vpop.f32.mrb[6].mxu0  ;;  %v519_v43 = vpop.f32.mrb[4].mxu1 }
 0x10a   : > { %v699_v41 = vpack.c.bf16 %v470_v40, %v466_v38  ;;  %v472_v42 = vpop.f32.mrb[7].mxu0  ;;  %v521_v46 = vpop.f32.mrb[5].mxu1 }
 0x10b   : > { %v2736_v45 = vpack.c.bf16 %v472_v42, %v468_v39  ;;  %v523_v48 = vpop.f32.mrb[6].mxu1  ;;  %v1000_v27 = vpop.permute.xlu1 %999 }
 0x10c   : > { %v721_v47 = vsel %vm714_vm1, %v699_v41, %v713_v44  ;;  %727 = vrot.lane.b32.xlu0 %v699_v41, %s2506_s18  ;;  %v2740_v49 = vpack.c.bf16 %v523_v48, %v519_v43  ;;  %v525_v50 = vpop.f32.mrb[7].mxu1  ;;  %v816_v30 = vpop.permute.xlu0 %815  ;;  %v769_v41 = vsel %vm714_vm1, %v2726_v31, %v764_v26 }
 0x10d   : > { %2334 = vmatmul.mubr.bf16.vlgmr.msra.gmra.mrb[16].mxu0 %v721_v47  ;;  %v2742_v51 = vpack.c.bf16 %v525_v50, %v521_v46  ;;  %v773_v46 = vsel %vm714_vm1, %v2736_v45, %v766_v28 }
 0x10f   : > { %v562_v52 = vpop.f32.mrb[8].mxu0  ;;  %v794_v29 = vpop.permute.xlu1 %793 }
 0x110   : > { %779 = vrot.lane.b32.xlu0 %v2736_v45, %s2506_s18  ;;  %v564_v53 = vpop.f32.mrb[9].mxu0  ;;  %v821_v45 = vsel %vm714_vm1, %v2730_v35, %v816_v30 }
 0x111   : > { %v566_v54 = vpop.f32.mrb[10].mxu0  ;;  %v615_v57 = vpop.f32.mrb[8].mxu1 }
 0x112   : > { %v907_v55 = vpack.c.bf16 %v566_v54, %v562_v52  ;;  %v568_v56 = vpop.f32.mrb[11].mxu0  ;;  %v617_v60 = vpop.f32.mrb[9].mxu1 }
 0x113   : > { %v2746_v59 = vpack.c.bf16 %v568_v56, %v564_v53  ;;  %v619_v62 = vpop.f32.mrb[10].mxu1  ;;  %v1002_v34 = vpop.permute.xlu1 %1001 }
 0x114   : > { %933 = vrot.lane.b32.xlu0 %v907_v55, %s2506_s18  ;;  %v925_v61 = vsel %vm714_vm1, %v907_v55, %v920_v58  ;;  %v2750_v63 = vpack.c.bf16 %v619_v62, %v615_v57  ;;  %v621_v0 = vpop.f32.mrb[11].mxu1 }
 0x115   : > { %2365 = vmatprep.mubr.bf16.mxu1 %v925_v61  ;;  %v2752_v1 = vpack.c.bf16 %v621_v0, %v617_v60  ;;  %v977_v56 = vsel %vm714_vm1, %v2746_v59, %v972_v23 }
 0x117   : > { %v572_v2 = vpop.f32.mrb[12].mxu0  ;;  %v1024_v38 = vpop.permute.xlu1 %1023 }
 0x118   : > { %985 = vrot.lane.b32.xlu0 %v2746_v59, %s2506_s18  ;;  %v574_v3 = vpop.f32.mrb[13].mxu0 }
 0x119   : > { %v576_v4 = vpop.f32.mrb[14].mxu0  ;;  %v625_v7 = vpop.f32.mrb[12].mxu1 }
 0x11a   : > { %v908_v5 = vpack.c.bf16 %v576_v4, %v572_v2  ;;  %v578_v6 = vpop.f32.mrb[15].mxu0  ;;  %v627_v10 = vpop.f32.mrb[13].mxu1 }
 0x11b   : > { %v2756_v9 = vpack.c.bf16 %v578_v6, %v574_v3  ;;  %v629_v13 = vpop.f32.mrb[14].mxu1  ;;  %v1026_v43 = vpop.permute.xlu1 %1025 }
 0x11c   : > { %v929_v11 = vsel %vm714_vm1, %v908_v5, %v922_v8  ;;  %935 = vrot.lane.b32.xlu0 %v908_v5, %s2506_s18  ;;  %v2761_v14 = vpack.c.bf16 %v629_v13, %v625_v7  ;;  %v631_v15 = vpop.f32.mrb[15].mxu1 }
 0x11d   : > { %2366 = vmatmul.mubr.bf16.vlgmr.msra.gmra.mrb[16].mxu1 %v929_v11  ;;  %v2763_v16 = vpack.c.bf16 %v631_v15, %v627_v10  ;;  %v981_v62 = vsel %vm714_vm1, %v2756_v9, %v974_v24 }
 0x11e   : > { %v1033_v10 = vsel %vm714_vm1, %v2761_v14, %v1026_v43 }
 0x11f   : > { %v844_v50 = vpop.permute.xlu1 %843 }
 0x120   : > { %817 = vrot.lane.b32.xlu0 %v2474_v12, %s2506_s18 }
 0x123   : > { %v1052_v55 = vpop.permute.xlu1 %1051 }
 0x124   : > { %829 = vrot.lane.b32.xlu0 %v2730_v35, %s2506_s18 }
 0x127   : > { %v846_v58 = vpop.permute.xlu1 %845 }
 0x128   : > { %1037 = vrot.lane.b32.xlu0 %v2750_v63, %s2506_s18 }
 0x12b   : > { %v1054_v2 = vpop.permute.xlu1 %1053 }
 0x12c   : > { %987 = vrot.lane.b32.xlu0 %v2756_v9, %s2506_s18 }
 0x12f   : > { %v1076_v5 = vpop.permute.xlu1 %1075 }
 0x130   : > { %831 = vrot.lane.b32.xlu0 %v2740_v49, %s2506_s18 }
 0x133   : > { %v1078_v8 = vpop.permute.xlu1 %1077 }
 0x134   : > { %1039 = vrot.lane.b32.xlu0 %v2761_v14, %s2506_s18  ;;  %v1081_v14 = vsel %vm714_vm1, %v2752_v1, %v1076_v5  ;;  %v1085_v23 = vsel %vm714_vm1, %v2763_v16, %v1078_v8 }
 0x137   : > { %v896_v13 = vpop.permute.xlu1 %895 }
 0x138   : > { %867 = vrot.lane.b32.xlu0 %v2475_v17, %s2506_s18 }
 0x13c   : > { %869 = vrot.lane.b32.xlu0 %v2476_v18, %s2506_s18 }
 0x140   : > { %881 = vrot.lane.b32.xlu0 %v2732_v37, %s2506_s18 }
 0x144   : > { %1089 = vrot.lane.b32.xlu0 %v2752_v1, %s2506_s18 }
 0x148   : > { %883 = vrot.lane.b32.xlu0 %v2742_v51, %s2506_s18 }
 0x14c   : > { %1091 = vrot.lane.b32.xlu0 %v2763_v16, %s2506_s18 }
 0x176   : > { %v726_v32 = vpop.permute.xlu0 %725 }
 0x177   : > { %v745_v33 = vsel %vm714_vm1, %v726_v32, %v740_v19  ;;  %v1104_v19 = vpop.permute.xlu1 %1103 }
 0x178   : > { %2337 = vmatprep.mubr.bf16.mxu0 %v745_v33 }
 0x17a   : > { %v778_v36 = vpop.permute.xlu0 %777 }
 0x17b   : > { %v797_v48 = vsel %vm714_vm1, %v778_v36, %v792_v25 }
 0x17e   : > { %v728_v39 = vpop.permute.xlu0 %727 }
 0x17f   : > { %v749_v40 = vsel %vm714_vm1, %v728_v39, %v742_v21 }
 0x180   : > { %2338 = vmatmul.mubr.bf16.gmra.mrb[20].mxu0 %v749_v40 }
 0x181   : > { %2341 = vmatprep.mubr.bf16.mxu0 %v769_v41 }
 0x182   : > { %v780_v42 = vpop.permute.xlu0 %779 }
 0x183   : > { %v801_v54 = vsel %vm714_vm1, %v780_v42, %v794_v29  ;;  %v2831_v29 = vld [vmem:[%s2950_s4] ss:$0 sm:$0xff] }
 0x186   : > { %v934_v44 = vpop.permute.xlu0 %933 }
 0x187   : > { %v953_v47 = vsel %vm714_vm1, %v934_v44, %v948_v20 }
 0x188   : > { %2342 = vmatmul.mubr.bf16.gmra.mrb[24].mxu0 %v773_v46  ;;  %2369 = vmatprep.mubr.bf16.mxu1 %v953_v47 }
 0x189   : > { %2345 = vmatprep.mubr.bf16.mxu0 %v797_v48 }
 0x18a   : > { %v986_v52 = vpop.permute.xlu0 %985 }
 0x18b   : > { %v1005_v35 = vsel %vm714_vm1, %v986_v52, %v1000_v27 }
 0x18e   : > { %v936_v53 = vpop.permute.xlu0 %935 }
 0x18f   : > { %v957_v31 = vsel %vm714_vm1, %v936_v53, %v950_v22 }
 0x190   : > { %2346 = vmatmul.mubr.bf16.gmra.mrb[28].mxu0 %v801_v54  ;;  %2370 = vmatmul.mubr.bf16.gmra.mrb[20].mxu1 %v957_v31 }
 0x191   : > { %2349 = vmatprep.mubr.bf16.mxu0 %v821_v45  ;;  %2373 = vmatprep.mubr.bf16.mxu1 %v977_v56 }
 0x192   : > { %v818_v57 = vpop.permute.xlu0 %817 }
 0x193   : > { %v825_v61 = vsel %vm714_vm1, %v2740_v49, %v818_v57  ;;  %v1029_v49 = vsel %vm714_vm1, %v2750_v63, %v1024_v38 }
 0x196   : > { %v830_v60 = vpop.permute.xlu0 %829 }
 0x197   : > { %v849_v0 = vsel %vm714_vm1, %v830_v60, %v844_v50 }
 0x198   : > { %2350 = vmatmul.mubr.bf16.gmra.mrb[32].mxu0 %v825_v61  ;;  %2374 = vmatmul.mubr.bf16.gmra.mrb[24].mxu1 %v981_v62 }
 0x199   : > { %2353 = vmatprep.mubr.bf16.mxu0 %v849_v0  ;;  %2377 = vmatprep.mubr.bf16.mxu1 %v1005_v35 }
 0x19a   : > { %v1038_v59 = vpop.permute.xlu0 %1037 }
 0x19b   : > { %v1057_v11 = vsel %vm714_vm1, %v1038_v59, %v1052_v55 }
 0x19e   : > { %v988_v3 = vpop.permute.xlu0 %987 }
 0x19f   : > { %v1009_v4 = vsel %vm714_vm1, %v988_v3, %v1002_v34 }
 0x1a0   : > { %2378 = vmatmul.mubr.bf16.gmra.mrb[28].mxu1 %v1009_v4 }
 0x1a1   : > { %2381 = vmatprep.mubr.bf16.mxu1 %v1029_v49 }
 0x1a2   : > { %v832_v6 = vpop.permute.xlu0 %831 }
 0x1a3   : > { %v853_v7 = vsel %vm714_vm1, %v832_v6, %v846_v58 }
 0x1a4   : > { %2354 = vmatmul.mubr.bf16.gmra.mrb[36].mxu0 %v853_v7 }
 0x1a6   : > { %v1040_v9 = vpop.permute.xlu0 %1039 }
 0x1a7   : > { %v1061_v18 = vsel %vm714_vm1, %v1040_v9, %v1054_v2 }
 0x1a8   : > { %2382 = vmatmul.mubr.bf16.gmra.mrb[32].mxu1 %v1033_v10 }
 0x1a9   : > { %2385 = vmatprep.mubr.bf16.mxu1 %v1057_v11 }
 0x1aa   : > { %v868_v12 = vpop.permute.xlu0 %867 }
 0x1ab   : > { %v873_v63 = vsel %vm714_vm1, %v2732_v37, %v868_v12  ;;  %v898_v37 = vpop.permute.xlu1 %897 }
 0x1ac   : > { %2357 = vmatprep.mubr.bf16.mxu0 %v873_v63 }
 0x1ae   : > { %v870_v15 = vpop.permute.xlu0 %869 }
 0x1af   : > { %v877_v17 = vsel %vm714_vm1, %v2742_v51, %v870_v15  ;;  %v1106_v1 = vpop.permute.xlu1 %1105 }
 0x1b0   : > { %2358 = vmatmul.mubr.bf16.gmra.mrb[40].mxu0 %v877_v17  ;;  %2386 = vmatmul.mubr.bf16.gmra.mrb[36].mxu1 %v1061_v18 }
 0x1b1   : > { %2389 = vmatprep.mubr.bf16.mxu1 %v1081_v14 }
 0x1b2   : > { %v882_v20 = vpop.permute.xlu0 %881 }
 0x1b3   : > { %v901_v21 = vsel %vm714_vm1, %v882_v20, %v896_v13 }
 0x1b4   : > { %2361 = vmatprep.mubr.bf16.mxu0 %v901_v21 }
 0x1b6   : > { %v1090_v22 = vpop.permute.xlu0 %1089 }
 0x1b7   : > { %v1109_v51 = vsel %vm714_vm1, %v1090_v22, %v1104_v19 }
 0x1b8   : > { %2390 = vmatmul.mubr.bf16.gmra.mrb[40].mxu1 %v1085_v23 }
 0x1b9   : > { %2393 = vmatprep.mubr.bf16.mxu1 %v1109_v51 }
 0x1ba   : > { %v884_v24 = vpop.permute.xlu0 %883 }
 0x1bb   : > { %v905_v25 = vsel %vm714_vm1, %v884_v24, %v898_v37 }
 0x1bc   : > { %2362 = vmatmul.mubr.bf16.gmra.mrb[44].mxu0 %v905_v25 }
 0x1be   : > { %v1092_v26 = vpop.permute.xlu0 %1091 }
 0x1bf   : > { %v1113_v27 = vsel %vm714_vm1, %v1092_v26, %v1106_v1 }
 0x1c0   : > { %2394 = vmatmul.mubr.bf16.gmra.mrb[44].mxu1 %v1113_v27 }
 0x1e0   : > { %v2335_v28 = vpop.f32.mrb[16].mxu0 }
 0x1e1   : > { %v1220_v16 = vpop.f32.mrb[17].mxu0  ;;  %v1229_v32 = vadd.f32 %v2335_v28, %v2831_v29 }
 0x1e2   : > { %v2336_v30 = vpop.f32.mrb[18].mxu0  ;;  %v1221_v36 = vadd.f32 %v2831_v29, %v1220_v16 }
 0x1e3   : > { %v1232_v33 = vadd.f32 %v2336_v30, %v2831_v29  ;;  %v1223_v34 = vpop.f32.mrb[19].mxu0 }
 0x1e4   : > { %v1224_v38 = vadd.f32 %v2831_v29, %v1223_v34 }
 0x1e5   : > { %v2094_v39 = vpack.c.bf16 %v1232_v33, %v1229_v32 }
 0x1e6   : > { %v2089_v40 = vpack.c.bf16 %v1224_v38, %v1221_v36 }
 0x1e7   : > { %2246 = vst [vmem:[%s2841_s23 + $0x8] sm:$0xff] %v2094_v39  }
 0x1e8   : > { %2090 = vst [vmem:[%s2841_s23] sm:$0xff] %v2089_v40  }
 0x1f0   : > { %v2367_v41 = vpop.f32.mrb[16].mxu1 }
 0x1f1   : > { %v1348_v42 = vpop.f32.mrb[17].mxu1  ;;  %v1357_v44 = vadd.f32 %v2367_v41, %v2831_v29 }
 0x1f2   : > { %v2368_v43 = vpop.f32.mrb[18].mxu1  ;;  %v1349_v48 = vadd.f32 %v2831_v29, %v1348_v42 }
 0x1f3   : > { %v1360_v46 = vadd.f32 %v2368_v43, %v2831_v29  ;;  %v1351_v47 = vpop.f32.mrb[19].mxu1 }
 0x1f4   : > { %v1352_v50 = vadd.f32 %v2831_v29, %v1351_v47 }
 0x1f5   : > { %v2174_v52 = vpack.c.bf16 %v1360_v46, %v1357_v44 }
 0x1f6   : > { %v2169_v53 = vpack.c.bf16 %v1352_v50, %v1349_v48 }
 0x1f7   : > { %2262 = vst [vmem:[%s2841_s23 + $0x88] sm:$0xff] %v2174_v52  }
 0x1f8   : > { %2261 = vst [vmem:[%s2841_s23 + $0x80] sm:$0xff] %v2169_v53  }
 0x253   : > { %v2339_v54 = vpop.f32.mrb[20].mxu0 }
 0x254   : > { %v1236_v31 = vpop.f32.mrb[21].mxu0  ;;  %v1245_v45 = vadd.f32 %v2339_v54, %v2831_v29 }
 0x255   : > { %v2340_v55 = vpop.f32.mrb[22].mxu0  ;;  %v1237_v58 = vadd.f32 %v2831_v29, %v1236_v31 }
 0x256   : > { %v1248_v56 = vadd.f32 %v2340_v55, %v2831_v29  ;;  %v1239_v57 = vpop.f32.mrb[23].mxu0 }
 0x257   : > { %v1240_v60 = vadd.f32 %v2831_v29, %v1239_v57 }
 0x258   : > { %v2104_v61 = vpack.c.bf16 %v1248_v56, %v1245_v45 }
 0x259   : > { %v2099_v62 = vpack.c.bf16 %v1240_v60, %v1237_v58 }
 0x25a   : > { %2248 = vst [vmem:[%s2841_s23 + $0x18] sm:$0xff] %v2104_v61  }
 0x25b   : > { %2247 = vst [vmem:[%s2841_s23 + $0x10] sm:$0xff] %v2099_v62   ;;  %v2343_v0 = vpop.f32.mrb[24].mxu0 }
 0x25c   : > { %v1252_v35 = vpop.f32.mrb[25].mxu0  ;;  %v1261_v2 = vadd.f32 %v2343_v0, %v2831_v29 }
 0x25d   : > { %v2344_v59 = vpop.f32.mrb[26].mxu0  ;;  %v1253_v49 = vadd.f32 %v2831_v29, %v1252_v35 }
 0x25e   : > { %v1264_v3 = vadd.f32 %v2344_v59, %v2831_v29  ;;  %v1255_v4 = vpop.f32.mrb[27].mxu0 }
 0x25f   : > { %v1256_v5 = vadd.f32 %v2831_v29, %v1255_v4 }
 0x260   : > { %v2114_v6 = vpack.c.bf16 %v1264_v3, %v1261_v2 }
 0x261   : > { %v2109_v7 = vpack.c.bf16 %v1256_v5, %v1253_v49 }
 0x262   : > { %2250 = vst [vmem:[%s2841_s23 + $0x28] sm:$0xff] %v2114_v6  }
 0x263   : > { %2249 = vst [vmem:[%s2841_s23 + $0x20] sm:$0xff] %v2109_v7   ;;  %v2347_v8 = vpop.f32.mrb[28].mxu0  ;;  %v2371_v9 = vpop.f32.mrb[20].mxu1 }
 0x264   : > { %v1268_v10 = vpop.f32.mrb[29].mxu0  ;;  %v1364_v11 = vpop.f32.mrb[21].mxu1  ;;  %v1277_v63 = vadd.f32 %v2347_v8, %v2831_v29  ;;  %v1373_v15 = vadd.f32 %v2371_v9, %v2831_v29 }
 0x265   : > { %v2348_v12 = vpop.f32.mrb[30].mxu0  ;;  %v2372_v13 = vpop.f32.mrb[22].mxu1  ;;  %v1269_v20 = vadd.f32 %v2831_v29, %v1268_v10  ;;  %v1365_v21 = vadd.f32 %v2831_v29, %v1364_v11 }
 0x266   : > { %v1280_v17 = vadd.f32 %v2348_v12, %v2831_v29  ;;  %v1376_v18 = vadd.f32 %v2372_v13, %v2831_v29  ;;  %v1271_v14 = vpop.f32.mrb[31].mxu0  ;;  %v1367_v19 = vpop.f32.mrb[23].mxu1 }
 0x267   : > { %v1272_v22 = vadd.f32 %v2831_v29, %v1271_v14  ;;  %v1368_v37 = vadd.f32 %v2831_v29, %v1367_v19 }
 0x268   : > { %v2124_v23 = vpack.c.bf16 %v1280_v17, %v1277_v63  ;;  %v2184_v51 = vpack.c.bf16 %v1376_v18, %v1373_v15 }
 0x269   : > { %v2119_v24 = vpack.c.bf16 %v1272_v22, %v1269_v20  ;;  %v2179_v25 = vpack.c.bf16 %v1368_v37, %v1365_v21 }
 0x26a   : > { %2252 = vst [vmem:[%s2841_s23 + $0x38] sm:$0xff] %v2124_v23   ;;  %2264 = vst [vmem:[%s2841_s23 + $0x98] sm:$0xff] %v2184_v51  }
 0x26b   : > { %2251 = vst [vmem:[%s2841_s23 + $0x30] sm:$0xff] %v2119_v24   ;;  %2263 = vst [vmem:[%s2841_s23 + $0x90] sm:$0xff] %v2179_v25   ;;  %v2351_v1 = vpop.f32.mrb[32].mxu0  ;;  %v2375_v26 = vpop.f32.mrb[24].mxu1 }
 0x26c   : > { %v1284_v27 = vpop.f32.mrb[33].mxu0  ;;  %v1380_v28 = vpop.f32.mrb[25].mxu1  ;;  %v1293_v32 = vadd.f32 %v2351_v1, %v2831_v29  ;;  %v1389_v33 = vadd.f32 %v2375_v26, %v2831_v29 }
 0x26d   : > { %v2352_v16 = vpop.f32.mrb[34].mxu0  ;;  %v2376_v30 = vpop.f32.mrb[26].mxu1  ;;  %v1285_v40 = vadd.f32 %v2831_v29, %v1284_v27  ;;  %v1381_v41 = vadd.f32 %v2831_v29, %v1380_v28 }
 0x26e   : > { %v1296_v34 = vadd.f32 %v2352_v16, %v2831_v29  ;;  %v1392_v36 = vadd.f32 %v2376_v30, %v2831_v29  ;;  %v1287_v38 = vpop.f32.mrb[35].mxu0  ;;  %v1383_v39 = vpop.f32.mrb[27].mxu1 }
 0x26f   : > { %v1288_v42 = vadd.f32 %v2831_v29, %v1287_v38  ;;  %v1384_v43 = vadd.f32 %v2831_v29, %v1383_v39 }
 0x270   : > { %v2134_v44 = vpack.c.bf16 %v1296_v34, %v1293_v32  ;;  %v2194_v46 = vpack.c.bf16 %v1392_v36, %v1389_v33 }
 0x271   : > { %v2129_v47 = vpack.c.bf16 %v1288_v42, %v1285_v40  ;;  %v2189_v48 = vpack.c.bf16 %v1384_v43, %v1381_v41 }
 0x272   : > { %2254 = vst [vmem:[%s2841_s23 + $0x48] sm:$0xff] %v2134_v44   ;;  %2266 = vst [vmem:[%s2841_s23 + $0xa8] sm:$0xff] %v2194_v46  }
 0x273   : > { %2253 = vst [vmem:[%s2841_s23 + $0x40] sm:$0xff] %v2129_v47   ;;  %2265 = vst [vmem:[%s2841_s23 + $0xa0] sm:$0xff] %v2189_v48   ;;  %v2379_v50 = vpop.f32.mrb[28].mxu1 }
 0x274   : > { %v1396_v52 = vpop.f32.mrb[29].mxu1  ;;  %v1405_v54 = vadd.f32 %v2379_v50, %v2831_v29 }
 0x275   : > { %v2380_v53 = vpop.f32.mrb[30].mxu1  ;;  %v1397_v45 = vadd.f32 %v2831_v29, %v1396_v52 }
 0x276   : > { %v1408_v31 = vadd.f32 %v2380_v53, %v2831_v29  ;;  %v1399_v55 = vpop.f32.mrb[31].mxu1 }
 0x277   : > { %v1400_v56 = vadd.f32 %v2831_v29, %v1399_v55  ;;  %v2355_v57 = vpop.f32.mrb[36].mxu0 }
 0x278   : > { %v2204_v58 = vpack.c.bf16 %v1408_v31, %v1405_v54  ;;  %v1300_v60 = vpop.f32.mrb[37].mxu0  ;;  %v1309_v0 = vadd.f32 %v2355_v57, %v2831_v29 }
 0x279   : > { %v2199_v61 = vpack.c.bf16 %v1400_v56, %v1397_v45  ;;  %v2356_v62 = vpop.f32.mrb[38].mxu0  ;;  %v1301_v2 = vadd.f32 %v2831_v29, %v1300_v60 }
 0x27a   : > { %2268 = vst [vmem:[%s2841_s23 + $0xb8] sm:$0xff] %v2204_v58   ;;  %v1312_v35 = vadd.f32 %v2356_v62, %v2831_v29  ;;  %v1303_v59 = vpop.f32.mrb[39].mxu0 }
 0x27b   : > { %2267 = vst [vmem:[%s2841_s23 + $0xb0] sm:$0xff] %v2199_v61   ;;  %v1304_v3 = vadd.f32 %v2831_v29, %v1303_v59  ;;  %v2383_v4 = vpop.f32.mrb[32].mxu1 }
 0x27c   : > { %v2144_v49 = vpack.c.bf16 %v1312_v35, %v1309_v0  ;;  %v1412_v5 = vpop.f32.mrb[33].mxu1  ;;  %v1421_v8 = vadd.f32 %v2383_v4, %v2831_v29 }
 0x27d   : > { %v2139_v6 = vpack.c.bf16 %v1304_v3, %v1301_v2  ;;  %v2384_v7 = vpop.f32.mrb[34].mxu1  ;;  %v1413_v11 = vadd.f32 %v2831_v29, %v1412_v5 }
 0x27e   : > { %2256 = vst [vmem:[%s2841_s23 + $0x58] sm:$0xff] %v2144_v49   ;;  %v1424_v9 = vadd.f32 %v2384_v7, %v2831_v29  ;;  %v1415_v10 = vpop.f32.mrb[35].mxu1 }
 0x27f   : > { %2255 = vst [vmem:[%s2841_s23 + $0x50] sm:$0xff] %v2139_v6   ;;  %v1416_v12 = vadd.f32 %v2831_v29, %v1415_v10 }
 0x280   : > { %v2214_v13 = vpack.c.bf16 %v1424_v9, %v1421_v8 }
 0x281   : > { %v2209_v63 = vpack.c.bf16 %v1416_v12, %v1413_v11 }
 0x282   : > { %2270 = vst [vmem:[%s2841_s23 + $0xc8] sm:$0xff] %v2214_v13  }
 0x283   : > { %2269 = vst [vmem:[%s2841_s23 + $0xc0] sm:$0xff] %v2209_v63   ;;  %v2359_v15 = vpop.f32.mrb[40].mxu0  ;;  %v2387_v17 = vpop.f32.mrb[36].mxu1 }
 0x284   : > { %v1316_v18 = vpop.f32.mrb[41].mxu0  ;;  %v1428_v14 = vpop.f32.mrb[37].mxu1  ;;  %v1325_v21 = vadd.f32 %v2359_v15, %v2831_v29  ;;  %v1437_v22 = vadd.f32 %v2387_v17, %v2831_v29 }
 0x285   : > { %v2360_v19 = vpop.f32.mrb[42].mxu0  ;;  %v2388_v20 = vpop.f32.mrb[38].mxu1  ;;  %v1317_v25 = vadd.f32 %v2831_v29, %v1316_v18  ;;  %v1429_v1 = vadd.f32 %v2831_v29, %v1428_v14 }
 0x286   : > { %v1328_v37 = vadd.f32 %v2360_v19, %v2831_v29  ;;  %v1440_v23 = vadd.f32 %v2388_v20, %v2831_v29  ;;  %v1319_v51 = vpop.f32.mrb[43].mxu0  ;;  %v1431_v24 = vpop.f32.mrb[39].mxu1 }
 0x287   : > { %v1320_v26 = vadd.f32 %v2831_v29, %v1319_v51  ;;  %v1432_v27 = vadd.f32 %v2831_v29, %v1431_v24 }
 0x288   : > { %v2154_v28 = vpack.c.bf16 %v1328_v37, %v1325_v21  ;;  %v2224_v16 = vpack.c.bf16 %v1440_v23, %v1437_v22 }
 0x289   : > { %v2149_v30 = vpack.c.bf16 %v1320_v26, %v1317_v25  ;;  %v2219_v32 = vpack.c.bf16 %v1432_v27, %v1429_v1 }
 0x28a   : > { %2258 = vst [vmem:[%s2841_s23 + $0x68] sm:$0xff] %v2154_v28   ;;  %2272 = vst [vmem:[%s2841_s23 + $0xd8] sm:$0xff] %v2224_v16  }
 0x28b   : > { %2257 = vst [vmem:[%s2841_s23 + $0x60] sm:$0xff] %v2149_v30   ;;  %2271 = vst [vmem:[%s2841_s23 + $0xd0] sm:$0xff] %v2219_v32   ;;  %v2391_v33 = vpop.f32.mrb[40].mxu1 }
 0x28c   : > { %v1444_v34 = vpop.f32.mrb[41].mxu1  ;;  %v1453_v38 = vadd.f32 %v2391_v33, %v2831_v29 }
 0x28d   : > { %v2392_v36 = vpop.f32.mrb[42].mxu1  ;;  %v1445_v41 = vadd.f32 %v2831_v29, %v1444_v34 }
 0x28e   : > { %v1456_v39 = vadd.f32 %v2392_v36, %v2831_v29  ;;  %v1447_v40 = vpop.f32.mrb[43].mxu1 }
 0x28f   : > { %v1448_v42 = vadd.f32 %v2831_v29, %v1447_v40  ;;  %v2363_v43 = vpop.f32.mrb[44].mxu0 }
 0x290   : > { %v2234_v44 = vpack.c.bf16 %v1456_v39, %v1453_v38  ;;  %v1332_v46 = vpop.f32.mrb[45].mxu0  ;;  %v1341_v50 = vadd.f32 %v2363_v43, %v2831_v29 }
 0x291   : > { %v2229_v47 = vpack.c.bf16 %v1448_v42, %v1445_v41  ;;  %v2364_v48 = vpop.f32.mrb[46].mxu0  ;;  %v1333_v54 = vadd.f32 %v2831_v29, %v1332_v46 }
 0x292   : > { %2274 = vst [vmem:[%s2841_s23 + $0xe8] sm:$0xff] %v2234_v44   ;;  %v1344_v52 = vadd.f32 %v2364_v48, %v2831_v29  ;;  %v1335_v53 = vpop.f32.mrb[47].mxu0 }
 0x293   : > { %2273 = vst [vmem:[%s2841_s23 + $0xe0] sm:$0xff] %v2229_v47   ;;  %v1336_v31 = vadd.f32 %v2831_v29, %v1335_v53  ;;  %v2395_v55 = vpop.f32.mrb[44].mxu1 }
 0x294   : > { %v2164_v45 = vpack.c.bf16 %v1344_v52, %v1341_v50  ;;  %v1460_v56 = vpop.f32.mrb[45].mxu1  ;;  %v1469_v60 = vadd.f32 %v2395_v55, %v2831_v29 }
 0x295   : > { %v2159_v57 = vpack.c.bf16 %v1336_v31, %v1333_v54  ;;  %v2396_v58 = vpop.f32.mrb[46].mxu1  ;;  %v1461_v0 = vadd.f32 %v2831_v29, %v1460_v56 }
 0x296   : > { %2260 = vst [vmem:[%s2841_s23 + $0x78] sm:$0xff] %v2164_v45   ;;  %v1472_v61 = vadd.f32 %v2396_v58, %v2831_v29  ;;  %v1463_v62 = vpop.f32.mrb[47].mxu1 }
 0x297   : > { %2259 = vst [vmem:[%s2841_s23 + $0x70] sm:$0xff] %v2159_v57   ;;  %v1464_v35 = vadd.f32 %v2831_v29, %v1463_v62 }
 0x298   : > { %v2244_v59 = vpack.c.bf16 %v1472_v61, %v1469_v60 }
 0x299   : > { %v2239_v2 = vpack.c.bf16 %v1464_v35, %v1461_v0 }
 0x29a   : > { %2276 = vst [vmem:[%s2841_s23 + $0xf8] sm:$0xff] %v2244_v59  }
 0x29b   : > { %2275 = vst [vmem:[%s2841_s23 + $0xf0] sm:$0xff] %v2239_v2  }
 0x29c PF: > { %p12_p9 = scmp.ge.s32.totalorder %s2554_s22, 4   ;;  %s2952_s18 = smov %s2499_s19 }
 0x29d   : > { %s2953_s19 = smov %s2563_s25  ;;  %s2954_s20 = smov %s2554_s22 }
 0x29e   :  { %14 = sbr.rel (!%p12_p9) target bundleno = 2 (0x2), region = 101 }

</bundles_post_ra>
